<compile_context>
chip_gen: v5e
topology: v5e:2x2
jax: 0.10.0
libtpu: 0.0.40
codegen_flags: <defaults>
</compile_context>

<pallas_src>
import jax
import jax.numpy as jnp
from jax.experimental import pallas as pl
from jax.experimental.pallas import tpu as pltpu

TAU = 2.0
V_THRESHOLD = 1.0
V_RESET = 0.0

_LANE = 128
_SUBLANE = 8
_MAX_TILE_B = 2048            # review: >=512-row tiles reach ~85% of HBM roofline
_VMEM_TILE_BUDGET = 32 << 20  # conservative: v7x scoped default (64 MiB physical)


def _round_up(n, m):
    return ((n + m - 1) // m) * m


# ---------------------------------------------------------------------------
# Kernel
# ---------------------------------------------------------------------------
def spiking_qnet_kernel(x_ref, w1_ref, b1_ref, wli_ref, bli_ref, out_ref):
    # fc1 + ReLU  (MXU matmul, f32 accumulate; elementwise stays f32)
    h = jnp.dot(x_ref[...], w1_ref[...], preferred_element_type=jnp.float32)
    h = jnp.maximum(h + b1_ref[...], 0.0)

    # LIF with zero initial state folded away:
    #   v = h / tau, spike iff v >= v_threshold  <=>  h >= tau * v_threshold,
    #   reset to v_reset (== 0).  The 1/tau scale lives in wli (pre-folded).
    v = jnp.where(h >= TAU * V_THRESHOLD, V_RESET, h)

    # readout layer 'li' (wli pre-scaled by 1/tau and lane-padded to 128)
    v = v.astype(wli_ref.dtype)  # bf16 path: cast only the MXU operand
    out = jnp.dot(v, wli_ref[...], preferred_element_type=jnp.float32)
    out_ref[...] = out + bli_ref[...]


# ---------------------------------------------------------------------------
# Wrapper
# ---------------------------------------------------------------------------
def pack_params(w1, b1, wli, bli, *, use_bf16=False):
    """Prepare kernel-side parameters from module weights.

    w1  : (input_size, hidden)   fc1 weight, already transposed (x @ w1)
    b1  : (hidden,)
    wli : (hidden, output_size)  'li' weight, transposed
    bli : (output_size,)

    Pads hidden/output lane dims to multiples of 128 and the contraction dim
    only to the matmul dtype's sublane granularity; folds the 1/tau LIF scale
    into wli.  Matmul operands optionally bf16 (fine on v5e/v6e/v7x MXUs).
    """
    # The 1/tau fold + `h >= tau*v_threshold` compare require v_reset == 0 and
    # no LIF state carried across calls (true for this module's forward).
    assert V_RESET == 0.0, "pack_params fold requires v_reset == 0"

    in_size, hidden = w1.shape
    out_size = wli.shape[1]
    k_sub = 16 if use_bf16 else _SUBLANE       # sublane packing of mm dtype
    k_pad = _round_up(in_size, k_sub)
    h_pad = _round_up(hidden, _LANE)
    n_pad = _round_up(out_size, _LANE)

    w1_p = jnp.zeros((k_pad, h_pad), jnp.float32).at[:in_size, :hidden].set(w1)
    b1_p = jnp.zeros((1, h_pad), jnp.float32).at[0, :hidden].set(b1)
    wli_p = jnp.zeros((h_pad, n_pad), jnp.float32).at[:hidden, :out_size].set(wli / TAU)
    bli_p = jnp.zeros((1, n_pad), jnp.float32).at[0, :out_size].set(bli)

    mm_dtype = jnp.bfloat16 if use_bf16 else jnp.float32
    return w1_p.astype(mm_dtype), b1_p, wli_p.astype(mm_dtype), bli_p


def _choose_tile_b(b_sub, k_pad, n_pad, mm_itemsize, weight_bytes):
    """Largest batch tile that fits the VMEM budget (v7x: keep >=2 grid steps)."""
    per_row = 2 * k_pad * mm_itemsize + 2 * n_pad * 4   # dbl-buffered x + out rows
    avail = _VMEM_TILE_BUDGET - weight_bytes - (2 << 20)  # compiler-scratch slack
    if avail < per_row * _SUBLANE:
        raise ValueError(
            "Resident weights do not fit the VMEM tile budget; use bf16 weights "
            "(pack_params(use_bf16=True)) or add a hidden-dim grid axis.")
    tb = max(_SUBLANE, (avail // per_row) // _SUBLANE * _SUBLANE)
    tb = min(tb, _MAX_TILE_B)
    # v7x megacore: with dimension_semantics=("parallel",) both TensorCores are
    # only used if the grid has >=2 steps; split when there is enough work.
    if b_sub >= 256:
        tb = min(tb, _round_up(pl.cdiv(b_sub, 2), _SUBLANE))
    return min(tb, b_sub)


def spiking_qnet_forward(x, params, out_size):
    w1_p, b1_p, wli_p, bli_p = params
    B, in_size = x.shape
    k_pad, h_pad = w1_p.shape
    n_pad = wli_p.shape[1]
    mm_dtype = w1_p.dtype
    mm_itemsize = jnp.dtype(mm_dtype).itemsize

    # Single-buffered resident weights + biases (see Buffered(1) below).
    weight_bytes = (k_pad * h_pad + h_pad * n_pad) * mm_itemsize + (h_pad + n_pad) * 4

    b_sub = _round_up(B, _SUBLANE)
    tb = _choose_tile_b(b_sub, k_pad, n_pad, mm_itemsize, weight_bytes)
    b_pad = _round_up(B, tb)
    grid = (b_pad // tb,)

    # At most one cast + one pad pass over x (none in the aligned f32 case).
    if x.dtype != mm_dtype:
        x = x.astype(mm_dtype)
    if b_pad != B or k_pad != in_size:
        x = jnp.pad(x, ((0, b_pad - B), (0, k_pad - in_size)))

    vmem_needed = weight_bytes + 2 * tb * k_pad * mm_itemsize + 2 * tb * n_pad * 4
    vmem_limit = int(min(48 << 20, max(16 << 20, 2 * vmem_needed + (4 << 20))))

    cost = pl.CostEstimate(
        flops=2 * b_pad * (k_pad * h_pad + h_pad * n_pad),
        transcendentals=0,
        bytes_accessed=(b_pad * k_pad * mm_itemsize    # x stream
                        + weight_bytes                 # resident weights/biases
                        + b_pad * n_pad * 4),          # out stream
    )

    resident = dict(pipeline_mode=pl.Buffered(1))  # constant blocks: no double-buffer

    out = pl.pallas_call(
        spiking_qnet_kernel,
        out_shape=jax.ShapeDtypeStruct((b_pad, n_pad), jnp.float32),
        grid=grid,
        in_specs=[
            pl.BlockSpec((tb, k_pad), lambda i: (i, 0)),            # x tiles stream
            pl.BlockSpec((k_pad, h_pad), lambda i: (0, 0), **resident),
            pl.BlockSpec((1, h_pad), lambda i: (0, 0), **resident),
            pl.BlockSpec((h_pad, n_pad), lambda i: (0, 0), **resident),
            pl.BlockSpec((1, n_pad), lambda i: (0, 0), **resident),
        ],
        out_specs=pl.BlockSpec((tb, n_pad), lambda i: (i, 0)),      # lane-dense store
        compiler_params=pltpu.CompilerParams(
            dimension_semantics=("parallel",),       # shard batch steps across TCs
            vmem_limit_bytes=vmem_limit),
        cost_estimate=cost,
    )(x, w1_p, b1_p, wli_p, bli_p)

    return out[:B, :out_size]


# ---------------------------------------------------------------------------
# Reference + demo
# ---------------------------------------------------------------------------
def init_params(key, input_size, hidden_size, output_size):
    """nn.Linear-style U(-1/sqrt(fan_in), 1/sqrt(fan_in)) init; weights stored
    already transposed to (in_features, out_features)."""
    k1, k2, k3, k4 = jax.random.split(key, 4)
    bound1 = 1.0 / (input_size ** 0.5)
    bound2 = 1.0 / (hidden_size ** 0.5)
    w1 = jax.random.uniform(k1, (input_size, hidden_size), jnp.float32, -bound1, bound1)
    b1 = jax.random.uniform(k2, (hidden_size,), jnp.float32, -bound1, bound1)
    wli = jax.random.uniform(k3, (hidden_size, output_size), jnp.float32, -bound2, bound2)
    bli = jax.random.uniform(k4, (output_size,), jnp.float32, -bound2, bound2)
    return w1, b1, wli, bli


def reference_forward(x, w1, b1, wli, bli, mm_dtype=jnp.float32):
    """Module math (v0 == 0); matmul operands optionally cast to mm_dtype with
    f32 accumulation, mirroring the kernel's bf16 option."""
    h = jnp.dot(x.astype(mm_dtype), w1.astype(mm_dtype),
                preferred_element_type=jnp.float32) + b1
    h = jnp.maximum(h, 0.0)
    v = h / TAU
    v = jnp.where(v >= V_THRESHOLD, V_RESET, v)
    return jnp.dot(v.astype(mm_dtype), wli.astype(mm_dtype),
                   preferred_element_type=jnp.float32) + bli


if __name__ == "__main__":
    INPUT, HIDDEN, OUTPUT = 32, 128, 8

    key = jax.random.PRNGKey(0)
    kx, kx2, kp = jax.random.split(key, 3)
    w1, b1, wli, bli = init_params(kp, INPUT, HIDDEN, OUTPUT)

    # --- small batch, f32 path: must match the module math exactly ----------
    B = 8
    x = 4.0 * jax.random.normal(kx, (B, INPUT), jnp.float32)  # some neurons spike
    params_f32 = pack_params(w1, b1, wli, bli, use_bf16=False)
    out = jax.block_until_ready(spiking_qnet_forward(x, params_f32, OUTPUT))
    ref = reference_forward(x, w1, b1, wli, bli)
    assert out.shape == (B, OUTPUT)
    assert jnp.allclose(out, ref, atol=1e-5, rtol=1e-5), "f32 kernel mismatch"

    # --- larger, non-aligned batch: exercises multi-step grid + batch pad ---
    B2 = 300
    x2 = 4.0 * jax.random.normal(kx2, (B2, INPUT), jnp.float32)
    out2 = jax.block_until_ready(spiking_qnet_forward(x2, params_f32, OUTPUT))
    ref2 = reference_forward(x2, w1, b1, wli, bli)
    assert out2.shape == (B2, OUTPUT)
    assert jnp.allclose(out2, ref2, atol=1e-5, rtol=1e-5), "tiled f32 kernel mismatch"

    # --- bf16 matmul-operand path (valid on v5e/v6e/v7x MXUs) ---------------
    params_bf16 = pack_params(w1, b1, wli, bli, use_bf16=True)
    out_bf16 = jax.block_until_ready(spiking_qnet_forward(x, params_bf16, OUTPUT))
    ref_bf16 = reference_forward(x, w1, b1, wli, bli, mm_dtype=jnp.bfloat16)
    assert jnp.allclose(out_bf16, ref_bf16, atol=1e-3, rtol=1e-3), "bf16 kernel mismatch"

    print("KERNEL_OK")
</pallas_src>

<mosaic_0001>
module attributes {stable_mosaic.version = 11 : i64} {
  func.func @spiking_qnet_kernel(%arg0: i32, %arg1: memref<8x32xf32, #tpu.memory_space<vmem>>, %arg2: memref<32x128xf32, #tpu.memory_space<vmem>>, %arg3: memref<1x128xf32, #tpu.memory_space<vmem>>, %arg4: memref<128x128xf32, #tpu.memory_space<vmem>>, %arg5: memref<1x128xf32, #tpu.memory_space<vmem>>, %arg6: memref<8x128xf32, #tpu.memory_space<vmem>>) attributes {dimension_semantics = [#tpu.dimension_semantics<parallel>], iteration_bounds = array<i64: 1>, scalar_prefetch = 0 : i64, scratch_operands = 0 : i64, tpu.core_type = #tpu.core_type<tc>, window_params = [{transform_indices = @transform_0, window_bounds = array<i64: 8, 32>}, {pipeline_mode = #tpu.pipeline_mode<synchronous>, transform_indices = @transform_1, window_bounds = array<i64: 32, 128>}, {pipeline_mode = #tpu.pipeline_mode<synchronous>, transform_indices = @transform_2, window_bounds = array<i64: 1, 128>}, {pipeline_mode = #tpu.pipeline_mode<synchronous>, transform_indices = @transform_3, window_bounds = array<i64: 128, 128>}, {pipeline_mode = #tpu.pipeline_mode<synchronous>, transform_indices = @transform_4, window_bounds = array<i64: 1, 128>}, {transform_indices = @transform_5, window_bounds = array<i64: 8, 128>}]} {
    %c0 = arith.constant 0 : index
    %c0_0 = arith.constant 0 : index
    %0 = vector.load %arg1[%c0, %c0_0] : memref<8x32xf32, #tpu.memory_space<vmem>>, vector<8x32xf32>
    %c0_1 = arith.constant 0 : index
    %c0_2 = arith.constant 0 : index
    %1 = vector.load %arg2[%c0_1, %c0_2] : memref<32x128xf32, #tpu.memory_space<vmem>>, vector<32x128xf32>
    %cst = arith.constant dense<0.000000e+00> : vector<8x128xf32>
    %2 = tpu.matmul %0, %1, %cst {dimension_numbers = #tpu.dot_dimension_numbers<[1], [0], [0], [1], [0, 0, 1, 1], [], []>} : vector<8x32xf32>, vector<32x128xf32>, vector<8x128xf32> -> vector<8x128xf32>
    %c0_3 = arith.constant 0 : index
    %c0_4 = arith.constant 0 : index
    %3 = vector.load %arg3[%c0_3, %c0_4] : memref<1x128xf32, #tpu.memory_space<vmem>>, vector<1x128xf32>
    %4 = vector.broadcast %3 : vector<1x128xf32> to vector<8x128xf32>
    %5 = arith.addf %2, %4 : vector<8x128xf32>
    %cst_5 = arith.constant 0.000000e+00 : f32
    %6 = vector.broadcast %cst_5 : f32 to vector<8x128xf32>
    %7 = arith.maximumf %5, %6 : vector<8x128xf32>
    %cst_6 = arith.constant 2.000000e+00 : f32
    %8 = vector.broadcast %cst_6 : f32 to vector<8x128xf32>
    %9 = arith.cmpf oge, %7, %8 : vector<8x128xf32>
    %cst_7 = arith.constant 0.000000e+00 : f32
    %10 = vector.broadcast %cst_7 : f32 to vector<8x128xf32>
    %11 = arith.select %9, %10, %7 : vector<8x128xi1>, vector<8x128xf32>
    %c0_8 = arith.constant 0 : index
    %c0_9 = arith.constant 0 : index
    %12 = vector.load %arg4[%c0_8, %c0_9] : memref<128x128xf32, #tpu.memory_space<vmem>>, vector<128x128xf32>
    %cst_10 = arith.constant dense<0.000000e+00> : vector<8x128xf32>
    %13 = tpu.matmul %11, %12, %cst_10 {dimension_numbers = #tpu.dot_dimension_numbers<[1], [0], [0], [1], [0, 0, 1, 1], [], []>} : vector<8x128xf32>, vector<128x128xf32>, vector<8x128xf32> -> vector<8x128xf32>
    %c0_11 = arith.constant 0 : index
    %c0_12 = arith.constant 0 : index
    %14 = vector.load %arg5[%c0_11, %c0_12] : memref<1x128xf32, #tpu.memory_space<vmem>>, vector<1x128xf32>
    %15 = vector.broadcast %14 : vector<1x128xf32> to vector<8x128xf32>
    %16 = arith.addf %13, %15 : vector<8x128xf32>
    %c0_13 = arith.constant 0 : index
    %c0_14 = arith.constant 0 : index
    %17 = vector.load %arg6[%c0_13, %c0_14] : memref<8x128xf32, #tpu.memory_space<vmem>>, vector<8x128xf32>
    tpu.vector_store %arg6[%c0_13, %c0_14], %16 {strides = array<i32>} : memref<8x128xf32, #tpu.memory_space<vmem>>, vector<8x128xf32>,
    return
  }
  func.func @transform_0(%arg0: i32) -> (i32, i32) {
    %c0_i32 = arith.constant 0 : i32
    %c0_i32_0 = arith.constant 0 : i32
    return %arg0, %c0_i32 : i32, i32
  }
  func.func @transform_1(%arg0: i32) -> (i32, i32) {
    %c0_i32 = arith.constant 0 : i32
    %c0_i32_0 = arith.constant 0 : i32
    %c0_i32_1 = arith.constant 0 : i32
    return %c0_i32, %c0_i32_0 : i32, i32
  }
  func.func @transform_2(%arg0: i32) -> (i32, i32) {
    %c0_i32 = arith.constant 0 : i32
    %c0_i32_0 = arith.constant 0 : i32
    %c0_i32_1 = arith.constant 0 : i32
    return %c0_i32, %c0_i32_0 : i32, i32
  }
  func.func @transform_3(%arg0: i32) -> (i32, i32) {
    %c0_i32 = arith.constant 0 : i32
    %c0_i32_0 = arith.constant 0 : i32
    %c0_i32_1 = arith.constant 0 : i32
    return %c0_i32, %c0_i32_0 : i32, i32
  }
  func.func @transform_4(%arg0: i32) -> (i32, i32) {
    %c0_i32 = arith.constant 0 : i32
    %c0_i32_0 = arith.constant 0 : i32
    %c0_i32_1 = arith.constant 0 : i32
    return %c0_i32, %c0_i32_0 : i32, i32
  }
  func.func @transform_5(%arg0: i32) -> (i32, i32) {
    %c0_i32 = arith.constant 0 : i32
    %c0_i32_0 = arith.constant 0 : i32
    return %arg0, %c0_i32 : i32, i32
  }
}

</mosaic_0001>

<bundles_post_ra>
// kernel: tpu_custom_call.1
= control target key start
LH: loop header
LB: loop body
LE: loop exit
PB: predicated region body
PF: predicated region fallthrough
CT: control target
= control target key end

     0   :  { %10 = vsyncpa [#allocation3], 0  ;;  %s328_s0 = inlined_call_operand.hbm [shape: f32[8,32], index: 0, kind: input, shape index: {}]   ;;  %s329_s1 = inlined_call_operand.hbm [shape: f32[32,128], index: 1, kind: input, shape index: {}]   ;;  %s330_s2 = inlined_call_operand.vmem [shape: f32[1,128], index: 2, kind: input, shape index: {}]   ;;  %s331_s3 = inlined_call_operand.hbm [shape: f32[128,128], index: 3, kind: input, shape index: {}]   ;;  %s332_s4 = inlined_call_operand.vmem [shape: f32[1,128], index: 4, kind: input, shape index: {}]   ;;  %s333_s5 = inlined_call_operand.hbm [shape: f32[8,128], index: 5, kind: output, shape index: {}]  }
   0x1   :  { %11 = vsyncpa [#allocation6], 0  ;;  %s28_s20 = sshll.u32 %s329_s1, 4  ;;  %s29_s20 = int_to_ptr.hbm [resolvable:$true] %s28_s20 }
   0x2   :  { %12 = vsyncpa [#allocation4], 0  ;;  %s274_s21 = smov [#allocation5]   ;;  %s18_s25 = sshll.u32 %s328_s0, 4  ;;  %s19_s25 = int_to_ptr.hbm [resolvable:$true] %s18_s25 }
   0x3   :  { %s30_s22 = sshll.u32 %s274_s21, 4  ;;  %s275_s26 = smov 128   ;;  %s31_s22 = int_to_ptr.vmem [resolvable:$true] %s30_s22 }
   0x4   :  { %s276_s27 = smov 8   ;;  %s277_s28 = smov [#allocation2]  }
   0x5   :  { %36 = dma.hbm_to_vmem [thread:$0]  %s29_s20, 512, %s31_s22, [#allocation6], %s275_s26, %s275_s26, %s276_s27  }
   0x6   :  { %s20_s29 = sshll.u32 %s277_s28, 4  ;;  %s43_s7 = sshll.u32 %s331_s3, 4  ;;  %s21_s29 = int_to_ptr.vmem [resolvable:$true] %s20_s29  ;;  %s44_s7 = int_to_ptr.hbm [resolvable:$true] %s43_s7 }
   0x7   :  { %23 = dma.hbm_to_vmem [thread:$0]  %s19_s25, 128, %s21_s29, [#allocation3]  }
   0x8   :  { %s278_s1 = smov [#allocation7]  }
   0x9   :  { %s45_s8 = sshll.u32 %s278_s1, 4  ;;  %s46_s8 = int_to_ptr.vmem [resolvable:$true] %s45_s8 }
   0xa   :  { %51 = dma.hbm_to_vmem [thread:$0]  %s44_s7, 2048, %s46_s8, [#allocation6], %s275_s26, %s275_s26, %s276_s27  }
   0xb   :  { %268 = dma.done.wait [#allocation3], 128  }
   0xc   :  { %269 = vsyncadd [#allocation3], 4294967168 }
   0xd   :  { %270 = dma.done.wait [#allocation6], 2560  }
   0xe   :  { %271 = vsyncadd [#allocation6], 4294964736  ;;  %v70_v0 = vld [vmem:[#allocation5 + $0x18] sm:$0xff]  ;;  %v69_v1 = vld [vmem:[#allocation5 + $0x10] sm:$0xff]  ;;  %vm75_vm0 = vcmask 261120   ;;  %s279_s11 = smov [#allocation8]  }
   0xf   :  { %91 = vmatpush.msra.mxu0 %v70_v0  ;;  %v117_v2 = vld [vmem:[#allocation7 + $0x78] sm:$0xff]  ;;  %v68_v3 = vld [vmem:[#allocation5 + $0x8] sm:$0xff]  ;;  %v116_v4 = vld [vmem:[#allocation7 + $0x70] sm:$0xff]  ;;  %s148_s12 = sshll.u32 %s279_s11, 4  ;;  %s150_s15 = sshll.u32 %s333_s5, 4  ;;  %s149_s12 = int_to_ptr.vmem [resolvable:$true] %s148_s12  ;;  %s151_s15 = int_to_ptr.hbm [resolvable:$true] %s150_s15 }
  0x10   :  { %122 = vmatpush.msra.mxu1 %v117_v2  ;;  %v115_v5 = vld [vmem:[#allocation7 + $0x68] sm:$0xff]  ;;  %v67_v6 = vld [vmem:[#allocation5] sm:$0xff]  ;;  %v66_v7 = vld [vmem:[#allocation2] sm:$0xff] }
  0x11   :  { %92 = vmatpush.msra.mxu0 %v69_v1  ;;  %v114_v8 = vld [vmem:[#allocation7 + $0x60] sm:$0xff]  ;;  %v113_v9 = vld [vmem:[#allocation7 + $0x58] sm:$0xff]  ;;  %v112_v10 = vld [vmem:[#allocation7 + $0x50] sm:$0xff] }
  0x12   :  { %123 = vmatpush.msra.mxu1 %v116_v4  ;;  %v111_v11 = vld [vmem:[#allocation7 + $0x48] sm:$0xff]  ;;  %v110_v12 = vld [vmem:[#allocation7 + $0x40] sm:$0xff]  ;;  %v109_v13 = vld [vmem:[#allocation7 + $0x38] sm:$0xff] }
  0x13   :  { %93 = vmatpush.msra.mxu0 %v68_v3  ;;  %v108_v14 = vld [vmem:[#allocation7 + $0x30] sm:$0xff]  ;;  %v107_v15 = vld [vmem:[#allocation7 + $0x28] sm:$0xff]  ;;  %v106_v16 = vld [vmem:[#allocation7 + $0x20] sm:$0xff] }
  0x14   :  { %124 = vmatpush.msra.mxu1 %v115_v5  ;;  %v105_v17 = vld [vmem:[#allocation7 + $0x18] sm:$0xff]  ;;  %v104_v18 = vld [vmem:[#allocation7 + $0x10] sm:$0xff]  ;;  %v103_v19 = vld [vmem:[#allocation7 + $0x8] sm:$0xff] }
  0x15   :  { %94 = vmatpush.msra.mxu0 %v67_v6  ;;  %v102_v20 = vld [vmem:[#allocation7] sm:$0xff]  ;;  %v170_v21 = vld [vmem:[%s330_s2] ss:$0 sm:$0xff] }
  0x16   :  { %161 = vmatmul.msk.f32.vlgmr.msra.gmra.mxu0 %vm75_vm0, %v66_v7  ;;  %125 = vmatpush.msra.mxu1 %v114_v8  ;;  %v171_v25 = vld [vmem:[%s332_s4] ss:$0 sm:$0xff] }
  0x18   :  { %126 = vmatpush.msra.mxu1 %v113_v9 }
  0x1a   :  { %127 = vmatpush.msra.mxu1 %v112_v10 }
  0x1c   :  { %128 = vmatpush.msra.mxu1 %v111_v11 }
  0x1e   :  { %129 = vmatpush.msra.mxu1 %v110_v12 }
  0x20   :  { %130 = vmatpush.msra.mxu1 %v109_v13 }
  0x22   :  { %131 = vmatpush.msra.mxu1 %v108_v14 }
  0x24   :  { %132 = vmatpush.msra.mxu1 %v107_v15 }
  0x26   :  { %133 = vmatpush.msra.mxu1 %v106_v16 }
  0x28   :  { %134 = vmatpush.msra.mxu1 %v105_v17 }
  0x2a   :  { %135 = vmatpush.msra.mxu1 %v104_v18 }
  0x2c   :  { %136 = vmatpush.msra.mxu1 %v103_v19 }
  0x2e   :  { %137 = vmatpush.msra.mxu1 %v102_v20 }
  0x93   :  { %v96_v22 = vpop.f32.mrf.mxu0 }
  0x94   :  { %v97_v23 = vadd.f32 %v170_v21, %v96_v22 }
  0x96   :  { %v99_v24 = vmax.f32 %v97_v23, 0.0 }
  0x98   :  { %vm100_vm1 = vcmp.ge.f32.partialorder %v99_v24, 2.0 }
  0x99   :  { %vm162_vm2 = vmneg %vm100_vm1 }
  0x9a   :  { %163 = vmatmul.msk.f32.vlgmr.msra.gmra.mxu1 %vm162_vm2, %v99_v24 }
 0x117   :  { %v139_v26 = vpop.f32.mrf.mxu1 }
 0x118   :  { %v140_v27 = vadd.f32 %v171_v25, %v139_v26 }
 0x11a   :  { %142 = vst [vmem:[#allocation8] sm:$0xff] %v140_v27 }
 0x11b   :  { %153 = dma.vmem_to_hbm [thread:$0]  %s149_s12, 128, %s151_s15, [#allocation4]  }
 0x11c   :  { %272 = dma.done.wait [#allocation4], 128  }
 0x11d   :  { %273 = vsyncadd [#allocation4], 4294967168 }
 0x11e   :  { %158 = vsyncpa [#allocation3], 1 }
 0x11f   :  { %159 = vsyncpa [#allocation6], 1 }
 0x120   :  { %160 = vsyncpa [#allocation4], 1 }

</bundles_post_ra>
